<compile_context>
chip_gen: v7x
topology: tpu7x:2x2x1
jax: 0.10.0
libtpu: 0.0.40
codegen_flags: <defaults>
</compile_context>

<pallas_src>
import jax
import jax.numpy as jnp
from jax.experimental import pallas as pl
from jax.experimental.pallas import tpu as pltpu


def _l1norm_kernel(x_ref, o_ref):
    # x_ref: (tile_n, D) block in VMEM, D on the lane axis.
    x = x_ref[...]
    # Per-row L1 norm, accumulated in f32 regardless of input dtype.
    norm = jnp.sum(jnp.abs(x).astype(jnp.float32), axis=1, keepdims=True) + jnp.float32(1e-10)
    # Exact reciprocal (divide/Newton path on the VPU); norm is only (tile_n, 1).
    inv = pl.reciprocal(norm, approx=False)
    if x.dtype == jnp.float32:
        o_ref[...] = x * inv
    else:
        # Scale in native dtype: avoids upcasting the whole tile to f32 (one extra
        # rounding of `inv`, still within output-dtype ulp).
        o_ref[...] = (x * inv.astype(x.dtype)).astype(o_ref.dtype)


def _sublane_multiple(dtype) -> int:
    # Packed-tile constraint on the second-to-last block dim:
    # 8 rows for 32-bit, 16 for 16-bit (bf16), 32 for 8-bit dtypes.
    itemsize = jnp.dtype(dtype).itemsize
    return max(8, 32 // max(itemsize, 1))


def l1norm(x, *, tile_n=None, per_buf_budget_bytes=4 * 1024 * 1024):
    """L1-normalize rows of a 2D array (N, D) along dim=1 (feature axis)."""
    N, D = x.shape
    dtype = x.dtype
    itemsize = jnp.dtype(dtype).itemsize
    sub = _sublane_multiple(dtype)

    # --- tile_n from the VMEM byte budget (streaming kernel: bigger tile = less
    #     per-step overhead, up to the budget) ---
    bytes_per_row = D * itemsize
    budget_rows = max(sub, (per_buf_budget_bytes // max(bytes_per_row, 1)) // sub * sub)
    if tile_n is None:
        tile_n = budget_rows
    else:
        tile_n = max(sub, (int(tile_n) // sub) * sub)
        tile_n = min(tile_n, budget_rows)

    # Never taller than the (sublane-rounded) array.
    n_rounded = pl.cdiv(N, sub) * sub
    tile_n = min(tile_n, n_rounded)

    # Keep >= 2 grid steps whenever possible so the "parallel" axis can be sharded
    # across both TensorCores on v7x (harmless on single-TC v5e/v6e).
    if n_rounded >= 2 * sub:
        tile_n = min(tile_n, pl.cdiv(n_rounded, 2 * sub) * sub)
    tile_n = max(tile_n, sub)

    grid = (pl.cdiv(N, tile_n),)

    # Explicit VMEM limit from the actual footprint: (in + out) x double-buffering
    # x tile bytes, plus ~50% + 1 MiB slack for compiler-internal scratch. Clamped
    # to [16 MiB, 40 MiB] so it stays valid on every chip (v7x physical = 64 MiB).
    tile_bytes = tile_n * D * itemsize
    footprint = 2 * 2 * tile_bytes
    vmem_limit = int(min(max(footprint + footprint // 2 + (1 << 20), 16 * 1024 * 1024),
                         40 * 1024 * 1024))
    # TODO(synk): very wide D (a single sub x D tile above the per-buffer budget) needs
    # a two-pass D-blocked variant (accumulate |x| into a (tile_n,1) scratch, then a
    # second D-blocked scale pass); this version assumes one full row fits in a tile.

    return pl.pallas_call(
        _l1norm_kernel,
        out_shape=jax.ShapeDtypeStruct((N, D), dtype),
        grid_spec=pltpu.PrefetchScalarGridSpec(
            num_scalar_prefetch=0,
            grid=grid,
            in_specs=[pl.BlockSpec((tile_n, D), lambda i: (i, 0))],
            out_specs=pl.BlockSpec((tile_n, D), lambda i: (i, 0)),
        ),
        compiler_params=pltpu.CompilerParams(
            dimension_semantics=("parallel",),
            vmem_limit_bytes=vmem_limit,
        ),
    )(x)


if __name__ == "__main__":
    key = jax.random.PRNGKey(0)
    # tfeat descriptors: (batch, 128). Small, non-multiple-of-tile batch to exercise
    # the cdiv / ragged-last-tile path and the 2-step grid cap.
    N, D = 24, 128
    x = jax.random.normal(key, (N, D), dtype=jnp.float32)

    out = l1norm(x)
    out = jax.block_until_ready(out)

    # Reference (plain JAX, same semantics as the PyTorch module).
    ref = x / (jnp.sum(jnp.abs(x), axis=1, keepdims=True) + 1e-10)
    assert out.shape == ref.shape
    assert jnp.allclose(out, ref, atol=1e-6, rtol=1e-6), "f32 mismatch vs reference"

    # Exercise the native-dtype scale path (bf16): looser tolerance (bf16 ulp).
    xb = x.astype(jnp.bfloat16)
    outb = jax.block_until_ready(l1norm(xb))
    refb = (xb.astype(jnp.float32)
            / (jnp.sum(jnp.abs(xb.astype(jnp.float32)), axis=1, keepdims=True) + 1e-10))
    assert jnp.allclose(outb.astype(jnp.float32), refb, atol=2e-2, rtol=2e-2), \
        "bf16 mismatch vs reference"

    print("KERNEL_OK")
</pallas_src>

<mosaic_0001>
module attributes {stable_mosaic.version = 11 : i64} {
  func.func @_l1norm_kernel(%arg0: i32, %arg1: memref<16x128xf32, #tpu.memory_space<vmem>>, %arg2: memref<16x128xf32, #tpu.memory_space<vmem>>) attributes {dimension_semantics = [#tpu.dimension_semantics<parallel>], iteration_bounds = array<i64: 2>, scalar_prefetch = 0 : i64, scratch_operands = 0 : i64, tpu.core_type = #tpu.core_type<tc>, window_params = [{transform_indices = @transform_0, window_bounds = array<i64: 16, 128>}, {transform_indices = @transform_1, window_bounds = array<i64: 16, 128>}]} {
    %c0 = arith.constant 0 : index
    %c0_0 = arith.constant 0 : index
    %0 = vector.load %arg1[%c0, %c0_0] : memref<16x128xf32, #tpu.memory_space<vmem>>, vector<16x128xf32>
    %1 = math.absf %0 : vector<16x128xf32>
    %cst = arith.constant dense<0.000000e+00> : vector<16xf32>
    %2 = vector.multi_reduction <add>, %1, %cst [1] : vector<16x128xf32> to vector<16xf32>
    %3 = vector.shape_cast %2 : vector<16xf32> to vector<16x1xf32>
    %cst_1 = arith.constant 1.000000e-10 : f32
    %4 = vector.broadcast %cst_1 : f32 to vector<16x1xf32>
    %5 = arith.addf %3, %4 : vector<16x1xf32>
    %6 = tpu.reciprocal %5 : vector<16x1xf32> -> vector<16x1xf32>
    %7 = vector.broadcast %6 : vector<16x1xf32> to vector<16x128xf32>
    %8 = arith.mulf %0, %7 : vector<16x128xf32>
    %c0_2 = arith.constant 0 : index
    %c0_3 = arith.constant 0 : index
    %9 = vector.load %arg2[%c0_2, %c0_3] : memref<16x128xf32, #tpu.memory_space<vmem>>, vector<16x128xf32>
    tpu.vector_store %arg2[%c0_2, %c0_3], %8 {strides = array<i32>} : memref<16x128xf32, #tpu.memory_space<vmem>>, vector<16x128xf32>,
    return
  }
  func.func @transform_0(%arg0: i32) -> (i32, i32) {
    %c0_i32 = arith.constant 0 : i32
    %c0_i32_0 = arith.constant 0 : i32
    return %arg0, %c0_i32 : i32, i32
  }
  func.func @transform_1(%arg0: i32) -> (i32, i32) {
    %c0_i32 = arith.constant 0 : i32
    %c0_i32_0 = arith.constant 0 : i32
    return %arg0, %c0_i32 : i32, i32
  }
}

</mosaic_0001>

<bundles_post_ra>
// kernel: tpu_custom_call.1
= control target key start
LH: loop header
LB: loop body
LE: loop exit
PB: predicated region body
PF: predicated region fallthrough
CT: control target
= control target key end

     0   :  { %6 = vsyncpa [#allocation3], 0  ;;  %s613_s0 = inlined_call_operand.hbm [shape: f32[24,128], index: 0, kind: input, shape index: {}]   ;;  %s614_s1 = inlined_call_operand.hbm [shape: f32[24,128], index: 1, kind: output, shape index: {}]  }
   0x1   :  { %8 = vsyncpa [#allocation3 + $0x1], 0 }
   0x2   :  { %9 = vsyncpa [#allocation4], 0 }
   0x3   :  { %11 = vsyncpa [#allocation4 + $0x1], 0  ;;  %s443_s6 = smov 0   ;;  %s445_s7 = smov 0  }
   0x4   :  { %s447_s8 = smov 0   ;;  %s449_s9 = smov 0  }
   0x5 LB: > { %s464_s10 = sadd.s32 4294967295, %s425_s9   ;;  %s260_s11 = sadd.s32 4294967294, %s425_s9   ;;  %s425_s9 = sphi %s449_s9, %s624_s9   ;;  %s421_s8 = sphi %s447_s8, %s623_s8   ;;  %s417_s7 = sphi %s445_s7, %s622_s7   ;;  %s413_s6 = sphi %s443_s6, %s621_s6  }
   0x6   : > { %s468_s12 = sadd.s32 1, %s425_s9   ;;  %s24_s13 = sadd.s32 1, %s421_s8 }
   0x7   : > { %s21_s14 = ssub.s32 %s425_s9, %s468_s12  ;;  %p31_p0 = scmp.ne.s32.totalorder %s421_s8, %s417_s7 }
   0x8   : > { %p22_p1 = scmp.eq.s32.totalorder %s21_s14, 0  ;;  %p32_p2 = scmp.eq.s32.totalorder %s425_s9, 0 }
   0x9   : > { %p37_p3 = scmp.ne.s32.totalorder %s417_s7, %s413_s6  ;;  %p38_p4 = scmp.eq.s32.totalorder %s464_s10, 0 }
   0xa   : > { %s480_s15 = scalar_select %p22_p1, %s421_s8, %s24_s13  }
   0xb   : > { %p33_p5 = por %p32_p2, %p31_p0  ;;  %p482_p6 = por %p38_p4, %p37_p3 }
   0xc   : > { %p61_p7 = scmp.eq.s32.totalorder %s464_s10, 1  ;;  %p67_p8 = scmp.eq.s32.totalorder %s260_s11, 1 }
   0xd   : > { %p615_p11 = scmp.ge.s32.totalorder %s425_s9, 2 }
   0xe   : > { %p487_p9 = por %p61_p7, %p31_p0  ;;  %p491_p10 = por %p67_p8, %p37_p3 }
   0xf   : > { %83 = sbr.rel (%p615_p11) target bundleno = 57 (0x39), region = 16 }
  0x10   : > { %s618_s18 = scalar_select %p491_p10, 1, 0 }
  0x16   : > { %86 = sbr.rel (!%p33_p5) target bundleno = 57 (0x39), region = 20  ;;  %s87_s19 = sand.u32 (%p33_p5), 1, %s421_s8  }
  0x17   : > { %s264_s20 = sshll.u32 (%p33_p5), %s425_s9, 1  ;;  %s263_s21 = sshll.u32 (%p33_p5), %s87_s19, 4 }
  0x18   : > { %s93_s22 = ssub.s32 (%p33_p5), 3, %s264_s20  ;;  %s503_s25 = scalar_lea.sflag (%p33_p5), [#allocation3], %s87_s19 }
  0x19   : > { %p94_p12 = scmp.lt.s32.totalorder (%p33_p5), %s93_s22, 2  ;;  %s91_s26 = scalar_lea.vmem (%p33_p5), [#allocation2], %s263_s21 }
  0x1d   : > { %s626_s22 = smov (!%p94_p12, %s93_s22), 2 }
  0x1e   : > { %s500_s23 = sshll.u32 %s626_s22, 7 }
  0x1f   : > { %s98_s24 = ssub.s32 256, %s500_s23 }
  0x20   : > { %99 = vsyncadd %s503_s25, %s98_s24  ;;  %p266_p13 = scmp.ne.s32.totalorder %s500_s23, 0  ;;  %s282_s27 = sshll.u32 %s425_s9, 8 }
  0x21   : > { %s511_s30 = scalar_lea.hbm %s613_s0, %s282_s27  ;;  %s104_s2 = sshll.u32 %s91_s26, 4  ;;  %s513_s2 = int_to_ptr.vmem [resolvable:$true] %s104_s2 }
  0x22   : > { %s331_s3 = scalar_lea.hbm %s511_s30, %s500_s23  ;;  %s335_s11 = scalar_lea.hbm %s613_s0, 384 }
  0x23   : > { %p332_p0 = scmp.ne.s32.totalorder %s511_s30, %s331_s3  ;;  %p336_p3 = scmp.lt.u32.totalorder %s511_s30, %s613_s0 }
  0x24   : > { %p337_p4 = scmp.lt.u32.totalorder %s335_s11, %s331_s3  ;;  %p339_p7 = scmp.lt.u32.totalorder %s331_s3, %s511_s30 }
  0x25   : > { %p333_p1 = pnand %p332_p0, %p266_p13 }
  0x26   : > { %p338_p5 = por %p337_p4, %p336_p3 }
  0x27   : > { %p334_p2 = pneg %p333_p1 }
  0x28   : > { %p340_p8 = por %p339_p7, %p338_p5 }
  0x2a   : > { %p341_p12 = pnand %p340_p8, %p334_p2 }
  0x2c   : > { %344 = shalt.err (!%p341_p12)
}
  0x2d   : > { %s345_s19 = scalar_lea.vmem %s513_s2, %s500_s23  ;;  %s427_s20 = smov [#allocation2]  }
  0x2e   : > { %p346_p0 = scmp.ne.s32.totalorder %s513_s2, %s345_s19  ;;  %s349_s21 = sshll.u32 %s427_s20, 4  ;;  %s350_s21 = int_to_ptr.vmem [resolvable:$false] %s349_s21 }
  0x2f   : > { %s351_s22 = scalar_lea.vmem %s350_s21, 512  ;;  %p352_p10 = scmp.lt.s32.totalorder %s513_s2, %s350_s21 }
  0x30   : > { %p347_p1 = pnand %p346_p0, %p266_p13  ;;  %p353_p3 = scmp.lt.s32.totalorder %s351_s22, %s345_s19 }
  0x32   : > { %p348_p11 = pneg %p347_p1  ;;  %p354_p4 = por %p353_p3, %p352_p10 }
  0x34   : > { %p355_p5 = pnand %p354_p4, %p348_p11 }
  0x36   : > { %358 = shalt.err (!%p355_p5)
}
  0x37   : > { %s428_s24 = smov 128   ;;  %s429_s26 = smov 8  }
  0x38   : > { %110 = dma.hbm_to_vmem [thread:$0]  (%p266_p13), %s511_s30, %s500_s23, %s513_s2, %s503_s25, %s428_s24, %s428_s24, %s429_s26  }
  0x39 PF: > { %p270_p2 = scmp.ge.s32.totalorder %s425_s9, 1  ;;  %p112_p7 = scmp.lt.s32.totalorder %s425_s9, 3 }
  0x3b   : > { %p113_p8 = pnand %p270_p2, %p112_p7 }
  0x3c   : > { %s543_s27 = sand.u32 (!%p113_p8), 1, %s417_s7  }
  0x3d   : > { %116 = sbr.rel (%p113_p8) target bundleno = 262 (0x106), region = 24  ;;  %s271_s28 = sshll.u32 (!%p113_p8), %s543_s27, 4 }
  0x3e   : > { %s119_s29 = scalar_lea.sflag (!%p113_p8), [#allocation3], %s543_s27  ;;  %s122_s3 = scalar_lea.vmem (!%p113_p8), [#allocation2], %s271_s28 }
  0x44   : > { %404 = dma.done.wait (%p482_p6), %s119_s29, 256  }
  0x45   : > { %406 = vsyncadd (%p482_p6), %s119_s29, 4294967040  ;;  %v151_v0 = vld [vmem:[%s122_s3] sm:$0xff]  ;;  %v152_v1 = vld [vmem:[%s122_s3 + $0x8] sm:$0xff]  ;;  %s140_s23 = scalar_lea.vmem [#allocation5], %s271_s28  ;;  %s168_s16 = scalar_lea.sflag [#allocation4], %s543_s27 }
  0x46   : > { %v153_v2 = vand.u32 2147483647, %v151_v0  ;;  %v154_v3 = vand.u32 2147483647, %v152_v1  ;;  %s274_s25 = sshll.u32 (%p487_p9), %s464_s10, 1 }
  0x47   : > { %s176_s30 = ssub.s32 (%p487_p9), 3, %s274_s25 }
  0x48   : > { %155 = vadd.xlane.f32.xlu0 %v153_v2  ;;  %p177_p6 = scmp.lt.s32.totalorder (%p487_p9), %s176_s30, 2 }
  0x4c   : > { %157 = vadd.xlane.f32.xlu0 %v154_v3 }
  0xd5   : > { %v156_v4 = vpop.xlane.xlu0 %155 }
  0xd6   : > { %v159_v5 = vadd.f32 1e-10, %v156_v4 }
  0xd8   : > { %327 = vrcp.f32 %v159_v5 }
  0xd9   : > { %v158_v6 = vpop.xlane.xlu0 %157 }
  0xda   : > { %v160_v7 = vadd.f32 1e-10, %v158_v6 }
  0xdc   : > { %329 = vrcp.f32 %v160_v7 }
  0xe2   : > { %v328_v8 = vpop.eup %327 }
  0xe3   : > { %v163_v9 = vmul.f32 %v328_v8, %v151_v0  ;;  %174 = sbr.rel (!%p487_p9) target bundleno = 262 (0x106), region = 32 }
  0xe5   : > { %165 = vst [vmem:[%s140_s23] sm:$0xff] %v163_v9 }
  0xe6   : > { %v330_v10 = vpop.eup %329 }
  0xe7   : > { %v164_v11 = vmul.f32 %v330_v10, %v152_v1 }
  0xe9   : > { %166 = vst [vmem:[%s140_s23 + $0x8] sm:$0xff] %v164_v11 }
  0xea   : > { %s628_s30 = smov (!%p177_p6, %s176_s30), 2 }
  0xeb   : > { %s555_s2 = sshll.u32 %s628_s30, 7 }
  0xec   : > { %s181_s4 = ssub.s32 256, %s555_s2 }
  0xed   : > { %182 = vsyncadd %s168_s16, %s181_s4  ;;  %p276_p10 = scmp.ne.s32.totalorder %s555_s2, 0  ;;  %s283_s5 = sshll.u32 %s464_s10, 8 }
  0xee   : > { %s565_s13 = scalar_lea.hbm %s614_s1, %s283_s5  ;;  %s187_s14 = sshll.u32 %s140_s23, 4  ;;  %s567_s14 = int_to_ptr.vmem [resolvable:$true] %s187_s14 }
  0xef   : > { %s359_s19 = scalar_lea.vmem %s567_s14, %s555_s2  ;;  %s430_s20 = smov [#allocation5]  }
  0xf0   : > { %p360_p9 = scmp.ne.s32.totalorder %s567_s14, %s359_s19  ;;  %s363_s21 = sshll.u32 %s430_s20, 4  ;;  %s364_s21 = int_to_ptr.vmem [resolvable:$false] %s363_s21 }
  0xf1   : > { %s365_s10 = scalar_lea.vmem %s364_s21, 512  ;;  %p366_p12 = scmp.lt.s32.totalorder %s567_s14, %s364_s21 }
  0xf2   : > { %p361_p11 = pnand %p360_p9, %p276_p10  ;;  %p367_p0 = scmp.lt.s32.totalorder %s365_s10, %s359_s19 }
  0xf4   : > { %p362_p13 = pneg %p361_p11  ;;  %p368_p1 = por %p367_p0, %p366_p12 }
  0xf6   : > { %p369_p3 = pnand %p368_p1, %p362_p13 }
  0xf8   : > { %372 = shalt.err (!%p369_p3)
}
  0xf9   : > { %s373_s22 = scalar_lea.hbm %s565_s13, %s555_s2  ;;  %s377_s28 = scalar_lea.hbm %s614_s1, 384 }
  0xfa   : > { %p374_p4 = scmp.ne.s32.totalorder %s565_s13, %s373_s22  ;;  %p378_p7 = scmp.lt.u32.totalorder %s565_s13, %s614_s1 }
  0xfb   : > { %p379_p8 = scmp.lt.u32.totalorder %s377_s28, %s373_s22  ;;  %p381_p9 = scmp.lt.u32.totalorder %s373_s22, %s565_s13 }
  0xfc   : > { %p375_p5 = pnand %p374_p4, %p276_p10 }
  0xfd   : > { %p380_p6 = por %p379_p8, %p378_p7 }
  0xfe   : > { %p376_p2 = pneg %p375_p5 }
  0xff   : > { %p382_p11 = por %p381_p9, %p380_p6 }
 0x101   : > { %p383_p13 = pnand %p382_p11, %p376_p2 }
 0x103   : > { %386 = shalt.err (!%p383_p13)
}
 0x104   : > { %s431_s23 = smov 128   ;;  %s432_s25 = smov 8  }
 0x105   : > { %193 = dma.vmem_to_hbm [thread:$0]  (%p276_p10), %s567_s14, %s555_s2, %s565_s13, %s168_s16, %s431_s23, %s431_s23, %s432_s25  }
 0x106 PF: > { %s202_s30 = sand.u32 1, %s413_s6   ;;  %p619_p12 = scmp.ne.s32.totalorder %s618_s18, 0 }
 0x107   : > { %p620_p0 = scmp.ge.s32.totalorder %s425_s9, 2  ;;  %s203_s4 = scalar_lea.sflag [#allocation4], %s202_s30 }
 0x109   : > { %p287_p1 = pnand %p620_p0, %p619_p12 }
 0x10b   : > { %408 = dma.done.wait (!%p287_p1), %s203_s4, 256  }
 0x10c   : > { %410 = vsyncadd (!%p287_p1), %s203_s4, 4294967040  ;;  %p14_p3 = scmp.ge.s32.totalorder %s468_s12, 4   ;;  %s621_s6 = smov %s417_s7 }
 0x10d   : > { %s622_s7 = smov %s421_s8  ;;  %s623_s8 = smov %s480_s15 }
 0x10e   : > { %s624_s9 = smov %s468_s12  ;;  %16 = sbr.rel (!%p14_p3) target bundleno = 5 (0x5), region = 69 }
 0x115   :  { %208 = vsyncpa [#allocation3], 1 }
 0x116   :  { %210 = vsyncpa [#allocation3 + $0x1], 1 }
 0x117   :  { %211 = vsyncpa [#allocation4], 1 }
 0x118   :  { %213 = vsyncpa [#allocation4 + $0x1], 1 }

</bundles_post_ra>
